<compile_context>
chip_gen: v7x
topology: tpu7x:2x2x1
jax: 0.10.0
libtpu: 0.0.40
codegen_flags: <defaults>
</compile_context>

<pallas_src>
import functools
import math

import jax
import jax.numpy as jnp
from jax.experimental import pallas as pl
from jax.experimental.pallas import tpu as pltpu

HIDDEN_SIZE = 256
INPUT_SIZE = 784
OUTPUT_SIZE = 10
OUT_PAD = 128  # lane-dense padded output width (sliced back to 10 outside)


def _round_up(n, m):
    return ((n + m - 1) // m) * m


def _understanding_kernel(x_ref, w1_ref, b1_ref, params_ref, w2_ref, b2_ref, out_ref):
    # ---- input_transform: Linear(input -> hidden) ----
    # In-kernel f32 -> bf16 cast (VPU work, hidden under MXU/DMA); f32 accumulate.
    x_bf = x_ref[...].astype(jnp.bfloat16)                    # (TB, 784)
    h = jnp.dot(x_bf, w1_ref[...], preferred_element_type=jnp.float32)
    h = h + b1_ref[...]                                       # (TB, H) + (1, H)

    # ---- constrain_parameters (f32; 7 rows x 256 lanes -> a handful of EUP ops) ----
    raw = params_ref[...]                                     # (7, H)
    p = jax.nn.sigmoid(raw[0:1, :])                           # prior_knowledge
    k = jax.nn.sigmoid(raw[1:2, :])                           # complexity_factor
    c = jax.nn.sigmoid(raw[2:3, :])                           # context_clarity
    t = jax.nn.softplus(raw[3:4, :]) + 0.1                    # time_factor
    r = jax.nn.softplus(raw[4:5, :]) + 1.0                    # resistance
    a = jax.nn.sigmoid(raw[6:7, :])                           # attention
    # sigmoid(env)^a == exp(a * log_sigmoid(env_raw))  (numerically safe form)
    env_attention = jnp.exp(a * jax.nn.log_sigmoid(raw[5:6, :]))

    # ---- understanding_activation: U = (P*K*C)/(T*R) * E^A ----
    understanding = (p * k * c) / (t * r) * env_attention     # (1, H)
    h = h * understanding                                     # VPU broadcast

    # ---- output_layer (lane-padded to 128) + sigmoid, stored as bf16 ----
    o = jnp.dot(h.astype(jnp.bfloat16), w2_ref[...], preferred_element_type=jnp.float32)
    out_ref[...] = jax.nn.sigmoid(o + b2_ref[...]).astype(out_ref.dtype)


@functools.partial(jax.jit, static_argnames=("tile_b",))
def one_short_understanding_forward(x, w1, b1, params, w2, b2, *, tile_b=2048):
    """x: (B, 784); w1: (784, 256); b1: (1, 256); params: (7, 256);
    w2: (256, 10); b2: (1, 10).  Returns (B, 10) f32."""
    B = x.shape[0]
    x = x.astype(jnp.float32)                     # no wrapper bf16 pass over x

    # Weights: tiny one-off casts / pads (resident in VMEM across grid steps).
    w1_bf = w1.astype(jnp.bfloat16)
    b1f = b1.reshape(1, -1).astype(jnp.float32)
    params_f = params.astype(jnp.float32)
    w2p = jnp.zeros((HIDDEN_SIZE, OUT_PAD), jnp.bfloat16).at[:, :OUTPUT_SIZE].set(
        w2.astype(jnp.bfloat16))
    b2p = jnp.zeros((1, OUT_PAD), jnp.float32).at[:, :OUTPUT_SIZE].set(
        b2.reshape(1, -1).astype(jnp.float32))

    # Batch tile:
    #   * multiple of 8 (sublane granularity),
    #   * capped at tile_b (2048 default keeps ~15 MiB live VMEM -> v7x-safe),
    #   * and at round_up(cdiv(B,2),8) so there are >= 2 grid steps whenever
    #     possible (v7x shards the "parallel" axis across its 2 TensorCores).
    tb = min(_round_up(int(tile_b), 8), _round_up(pl.cdiv(B, 2), 8))
    n_tiles = pl.cdiv(B, tb)                      # ragged last block, no jnp.pad

    cost = pl.CostEstimate(
        flops=2 * B * (INPUT_SIZE * HIDDEN_SIZE + HIDDEN_SIZE * OUT_PAD),
        transcendentals=B * OUT_PAD + n_tiles * 9 * HIDDEN_SIZE,
        bytes_accessed=(x.size * 4 + w1_bf.size * 2 + w2p.size * 2
                        + b1f.size * 4 + b2p.size * 4 + params_f.size * 4
                        + B * OUT_PAD * 2),
    )

    out = pl.pallas_call(
        _understanding_kernel,
        out_shape=jax.ShapeDtypeStruct((B, OUT_PAD), jnp.bfloat16),
        grid=(n_tiles,),
        in_specs=[
            pl.BlockSpec((tb, INPUT_SIZE), lambda i: (i, 0)),            # x (streamed, f32)
            pl.BlockSpec((INPUT_SIZE, HIDDEN_SIZE), lambda i: (0, 0)),   # W1 (resident)
            pl.BlockSpec((1, HIDDEN_SIZE), lambda i: (0, 0)),            # b1
            pl.BlockSpec((7, HIDDEN_SIZE), lambda i: (0, 0)),            # stacked params
            pl.BlockSpec((HIDDEN_SIZE, OUT_PAD), lambda i: (0, 0)),      # W2 (padded)
            pl.BlockSpec((1, OUT_PAD), lambda i: (0, 0)),                # b2 (padded)
        ],
        out_specs=pl.BlockSpec((tb, OUT_PAD), lambda i: (i, 0)),
        compiler_params=pltpu.CompilerParams(
            dimension_semantics=("parallel",),
            vmem_limit_bytes=48 << 20,
        ),
        cost_estimate=cost,
    )(x, w1_bf, b1f, params_f, w2p, b2p)

    # Padded columns 10..127 hold sigmoid(0)=0.5; slice them off (from bf16),
    # cast the tiny (B, 10) result back to f32 for interface parity.
    return out[:, :OUTPUT_SIZE].astype(jnp.float32)


def init_params(key):
    """Deterministic parameter init mirroring the PyTorch module's shapes."""
    keys = jax.random.split(key, 6)
    # 7 understanding parameter vectors ~ torch.rand(hidden_size) in [0,1)
    # rows: prior_knowledge, complexity_factor, context_clarity, time_factor,
    #       resistance, env_factor, attention
    params = jax.random.uniform(keys[0], (7, HIDDEN_SIZE), dtype=jnp.float32)
    lim1 = 1.0 / math.sqrt(INPUT_SIZE)
    w1 = jax.random.uniform(keys[1], (INPUT_SIZE, HIDDEN_SIZE),
                            minval=-lim1, maxval=lim1, dtype=jnp.float32)
    b1 = jax.random.uniform(keys[2], (1, HIDDEN_SIZE),
                            minval=-lim1, maxval=lim1, dtype=jnp.float32)
    lim2 = 1.0 / math.sqrt(HIDDEN_SIZE)
    w2 = jax.random.uniform(keys[3], (HIDDEN_SIZE, OUTPUT_SIZE),
                            minval=-lim2, maxval=lim2, dtype=jnp.float32)
    b2 = jax.random.uniform(keys[4], (1, OUTPUT_SIZE),
                            minval=-lim2, maxval=lim2, dtype=jnp.float32)
    return w1, b1, params, w2, b2


def reference_forward(x, w1, b1, params, w2, b2):
    """Plain-JAX f32 reference for sanity checking."""
    h = x @ w1 + b1.reshape(1, -1)
    p = jax.nn.sigmoid(params[0])
    k = jax.nn.sigmoid(params[1])
    c = jax.nn.sigmoid(params[2])
    t = jax.nn.softplus(params[3]) + 0.1
    r = jax.nn.softplus(params[4]) + 1.0
    e = jax.nn.sigmoid(params[5])
    a = jax.nn.sigmoid(params[6])
    u = (p * k * c) / (t * r) * jnp.power(e, a)
    h = u * h
    return jax.nn.sigmoid(h @ w2 + b2.reshape(1, -1))


if __name__ == "__main__":
    key = jax.random.PRNGKey(0)
    k_x, k_p = jax.random.split(key)
    w1, b1, params, w2, b2 = init_params(k_p)

    # Small single-tile check (B = 8).
    batch = 8
    x = jax.random.normal(k_x, (batch, INPUT_SIZE), dtype=jnp.float32)
    out = jax.block_until_ready(
        one_short_understanding_forward(x, w1, b1, params, w2, b2))
    ref = reference_forward(x, w1, b1, params, w2, b2)
    assert out.shape == (batch, OUTPUT_SIZE)
    # bf16 MXU inputs + bf16 output slab -> slightly relaxed tolerance.
    assert jnp.allclose(out, ref, atol=2e-2, rtol=0.0), \
        float(jnp.max(jnp.abs(out - ref)))

    # Multi-tile check with a ragged batch (exercises grid pipeline + ragged
    # last block, no pad/copy of x).
    batch2 = 300
    x2 = jax.random.normal(jax.random.PRNGKey(1), (batch2, INPUT_SIZE),
                           dtype=jnp.float32)
    out2 = jax.block_until_ready(
        one_short_understanding_forward(x2, w1, b1, params, w2, b2, tile_b=128))
    ref2 = reference_forward(x2, w1, b1, params, w2, b2)
    assert out2.shape == (batch2, OUTPUT_SIZE)
    assert jnp.allclose(out2, ref2, atol=2e-2, rtol=0.0), \
        float(jnp.max(jnp.abs(out2 - ref2)))

    print("KERNEL_OK")
</pallas_src>

<mosaic_0001>
module attributes {stable_mosaic.version = 11 : i64} {
  func.func @_understanding_kernel(%arg0: i32, %arg1: memref<8x784xf32, #tpu.memory_space<vmem>>, %arg2: memref<784x256xbf16, #tpu.memory_space<vmem>>, %arg3: memref<1x256xf32, #tpu.memory_space<vmem>>, %arg4: memref<7x256xf32, #tpu.memory_space<vmem>>, %arg5: memref<256x128xbf16, #tpu.memory_space<vmem>>, %arg6: memref<1x128xf32, #tpu.memory_space<vmem>>, %arg7: memref<8x128xbf16, #tpu.memory_space<vmem>>) attributes {dimension_semantics = [#tpu.dimension_semantics<parallel>], iteration_bounds = array<i64: 1>, scalar_prefetch = 0 : i64, scratch_operands = 0 : i64, tpu.core_type = #tpu.core_type<tc>, window_params = [{transform_indices = @transform_0, window_bounds = array<i64: 8, 784>}, {pipeline_mode = #tpu.pipeline_mode<synchronous>, transform_indices = @transform_1, window_bounds = array<i64: 784, 256>}, {pipeline_mode = #tpu.pipeline_mode<synchronous>, transform_indices = @transform_2, window_bounds = array<i64: 1, 256>}, {pipeline_mode = #tpu.pipeline_mode<synchronous>, transform_indices = @transform_3, window_bounds = array<i64: 7, 256>}, {pipeline_mode = #tpu.pipeline_mode<synchronous>, transform_indices = @transform_4, window_bounds = array<i64: 256, 128>}, {pipeline_mode = #tpu.pipeline_mode<synchronous>, transform_indices = @transform_5, window_bounds = array<i64: 1, 128>}, {transform_indices = @transform_6, window_bounds = array<i64: 8, 128>}]} {
    %c0 = arith.constant 0 : index
    %c0_0 = arith.constant 0 : index
    %0 = vector.load %arg1[%c0, %c0_0] : memref<8x784xf32, #tpu.memory_space<vmem>>, vector<8x784xf32>
    %1 = arith.truncf %0 : vector<8x784xf32> to vector<8x784xbf16>
    %c0_1 = arith.constant 0 : index
    %c0_2 = arith.constant 0 : index
    %2 = vector.load %arg2[%c0_1, %c0_2] : memref<784x256xbf16, #tpu.memory_space<vmem>>, vector<784x256xbf16>
    %cst = arith.constant dense<0.000000e+00> : vector<8x256xf32>
    %3 = tpu.matmul %1, %2, %cst {dimension_numbers = #tpu.dot_dimension_numbers<[1], [0], [0], [1], [0, 0, 1, 1], [], []>} : vector<8x784xbf16>, vector<784x256xbf16>, vector<8x256xf32> -> vector<8x256xf32>
    %c0_3 = arith.constant 0 : index
    %c0_4 = arith.constant 0 : index
    %4 = vector.load %arg3[%c0_3, %c0_4] : memref<1x256xf32, #tpu.memory_space<vmem>>, vector<1x256xf32>
    %5 = vector.broadcast %4 : vector<1x256xf32> to vector<8x256xf32>
    %6 = arith.addf %3, %5 : vector<8x256xf32>
    %c0_5 = arith.constant 0 : index
    %c0_6 = arith.constant 0 : index
    %7 = vector.load %arg4[%c0_5, %c0_6] : memref<7x256xf32, #tpu.memory_space<vmem>>, vector<7x256xf32>
    %8 = vector.extract_strided_slice %7 {offsets = [0, 0], sizes = [1, 256], strides = [1, 1]} : vector<7x256xf32> to vector<1x256xf32>
    %9 = arith.negf %8 : vector<1x256xf32>
    %10 = math.exp %9 : vector<1x256xf32>
    %cst_7 = arith.constant 1.000000e+00 : f32
    %11 = vector.broadcast %cst_7 : f32 to vector<1x256xf32>
    %12 = arith.addf %11, %10 : vector<1x256xf32>
    %13 = arith.divf %11, %12 : vector<1x256xf32>
    %14 = vector.extract_strided_slice %7 {offsets = [1, 0], sizes = [1, 256], strides = [1, 1]} : vector<7x256xf32> to vector<1x256xf32>
    %15 = arith.negf %14 : vector<1x256xf32>
    %16 = math.exp %15 : vector<1x256xf32>
    %cst_8 = arith.constant 1.000000e+00 : f32
    %17 = vector.broadcast %cst_8 : f32 to vector<1x256xf32>
    %18 = arith.addf %17, %16 : vector<1x256xf32>
    %19 = arith.divf %17, %18 : vector<1x256xf32>
    %20 = vector.extract_strided_slice %7 {offsets = [2, 0], sizes = [1, 256], strides = [1, 1]} : vector<7x256xf32> to vector<1x256xf32>
    %21 = arith.negf %20 : vector<1x256xf32>
    %22 = math.exp %21 : vector<1x256xf32>
    %cst_9 = arith.constant 1.000000e+00 : f32
    %23 = vector.broadcast %cst_9 : f32 to vector<1x256xf32>
    %24 = arith.addf %23, %22 : vector<1x256xf32>
    %25 = arith.divf %23, %24 : vector<1x256xf32>
    %26 = vector.extract_strided_slice %7 {offsets = [3, 0], sizes = [1, 256], strides = [1, 1]} : vector<7x256xf32> to vector<1x256xf32>
    %cst_10 = arith.constant 0.000000e+00 : f32
    %27 = vector.broadcast %cst_10 : f32 to vector<1x256xf32>
    %28 = arith.maximumf %26, %27 : vector<1x256xf32>
    %29 = vector.broadcast %cst_10 : f32 to vector<1x256xf32>
    %30 = arith.subf %26, %29 : vector<1x256xf32>
    %31 = arith.cmpf one, %30, %30 : vector<1x256xf32>
    %32 = vector.broadcast %cst_10 : f32 to vector<1x256xf32>
    %33 = arith.addf %26, %32 : vector<1x256xf32>
    %34 = math.absf %30 : vector<1x256xf32>
    %cst_11 = arith.constant 0.000000e+00 : f32
    %35 = vector.broadcast %cst_11 : f32 to vector<1x256xf32>
    %36 = arith.subf %35, %34 : vector<1x256xf32>
    %37 = math.exp %36 : vector<1x256xf32>
    %38 = math.log1p %37 : vector<1x256xf32>
    %39 = arith.addf %28, %38 : vector<1x256xf32>
    %40 = arith.select %31, %33, %39 : vector<1x256xi1>, vector<1x256xf32>
    %cst_12 = arith.constant 1.000000e-01 : f32
    %41 = vector.broadcast %cst_12 : f32 to vector<1x256xf32>
    %42 = arith.addf %40, %41 : vector<1x256xf32>
    %43 = vector.extract_strided_slice %7 {offsets = [4, 0], sizes = [1, 256], strides = [1, 1]} : vector<7x256xf32> to vector<1x256xf32>
    %cst_13 = arith.constant 0.000000e+00 : f32
    %44 = vector.broadcast %cst_13 : f32 to vector<1x256xf32>
    %45 = arith.maximumf %43, %44 : vector<1x256xf32>
    %46 = vector.broadcast %cst_13 : f32 to vector<1x256xf32>
    %47 = arith.subf %43, %46 : vector<1x256xf32>
    %48 = arith.cmpf one, %47, %47 : vector<1x256xf32>
    %49 = vector.broadcast %cst_13 : f32 to vector<1x256xf32>
    %50 = arith.addf %43, %49 : vector<1x256xf32>
    %51 = math.absf %47 : vector<1x256xf32>
    %cst_14 = arith.constant 0.000000e+00 : f32
    %52 = vector.broadcast %cst_14 : f32 to vector<1x256xf32>
    %53 = arith.subf %52, %51 : vector<1x256xf32>
    %54 = math.exp %53 : vector<1x256xf32>
    %55 = math.log1p %54 : vector<1x256xf32>
    %56 = arith.addf %45, %55 : vector<1x256xf32>
    %57 = arith.select %48, %50, %56 : vector<1x256xi1>, vector<1x256xf32>
    %cst_15 = arith.constant 1.000000e+00 : f32
    %58 = vector.broadcast %cst_15 : f32 to vector<1x256xf32>
    %59 = arith.addf %57, %58 : vector<1x256xf32>
    %60 = vector.extract_strided_slice %7 {offsets = [6, 0], sizes = [1, 256], strides = [1, 1]} : vector<7x256xf32> to vector<1x256xf32>
    %61 = arith.negf %60 : vector<1x256xf32>
    %62 = math.exp %61 : vector<1x256xf32>
    %cst_16 = arith.constant 1.000000e+00 : f32
    %63 = vector.broadcast %cst_16 : f32 to vector<1x256xf32>
    %64 = arith.addf %63, %62 : vector<1x256xf32>
    %65 = arith.divf %63, %64 : vector<1x256xf32>
    %66 = vector.extract_strided_slice %7 {offsets = [5, 0], sizes = [1, 256], strides = [1, 1]} : vector<7x256xf32> to vector<1x256xf32>
    %cst_17 = arith.constant 0.000000e+00 : f32
    %67 = vector.broadcast %cst_17 : f32 to vector<1x256xf32>
    %68 = arith.subf %67, %66 : vector<1x256xf32>
    %cst_18 = arith.constant 0.000000e+00 : f32
    %69 = vector.broadcast %cst_18 : f32 to vector<1x256xf32>
    %70 = arith.maximumf %68, %69 : vector<1x256xf32>
    %71 = vector.broadcast %cst_18 : f32 to vector<1x256xf32>
    %72 = arith.subf %68, %71 : vector<1x256xf32>
    %73 = arith.cmpf one, %72, %72 : vector<1x256xf32>
    %74 = vector.broadcast %cst_18 : f32 to vector<1x256xf32>
    %75 = arith.addf %68, %74 : vector<1x256xf32>
    %76 = math.absf %72 : vector<1x256xf32>
    %cst_19 = arith.constant 0.000000e+00 : f32
    %77 = vector.broadcast %cst_19 : f32 to vector<1x256xf32>
    %78 = arith.subf %77, %76 : vector<1x256xf32>
    %79 = math.exp %78 : vector<1x256xf32>
    %80 = math.log1p %79 : vector<1x256xf32>
    %81 = arith.addf %70, %80 : vector<1x256xf32>
    %82 = arith.select %73, %75, %81 : vector<1x256xi1>, vector<1x256xf32>
    %cst_20 = arith.constant 0.000000e+00 : f32
    %83 = vector.broadcast %cst_20 : f32 to vector<1x256xf32>
    %84 = arith.subf %83, %82 : vector<1x256xf32>
    %85 = arith.mulf %65, %84 : vector<1x256xf32>
    %86 = math.exp %85 : vector<1x256xf32>
    %87 = arith.mulf %13, %19 : vector<1x256xf32>
    %88 = arith.mulf %87, %25 : vector<1x256xf32>
    %89 = arith.mulf %42, %59 : vector<1x256xf32>
    %90 = arith.divf %88, %89 : vector<1x256xf32>
    %91 = arith.mulf %90, %86 : vector<1x256xf32>
    %92 = vector.broadcast %91 : vector<1x256xf32> to vector<8x256xf32>
    %93 = arith.mulf %6, %92 : vector<8x256xf32>
    %94 = arith.truncf %93 : vector<8x256xf32> to vector<8x256xbf16>
    %c0_21 = arith.constant 0 : index
    %c0_22 = arith.constant 0 : index
    %95 = vector.load %arg5[%c0_21, %c0_22] : memref<256x128xbf16, #tpu.memory_space<vmem>>, vector<256x128xbf16>
    %cst_23 = arith.constant dense<0.000000e+00> : vector<8x128xf32>
    %96 = tpu.matmul %94, %95, %cst_23 {dimension_numbers = #tpu.dot_dimension_numbers<[1], [0], [0], [1], [0, 0, 1, 1], [], []>} : vector<8x256xbf16>, vector<256x128xbf16>, vector<8x128xf32> -> vector<8x128xf32>
    %c0_24 = arith.constant 0 : index
    %c0_25 = arith.constant 0 : index
    %97 = vector.load %arg6[%c0_24, %c0_25] : memref<1x128xf32, #tpu.memory_space<vmem>>, vector<1x128xf32>
    %98 = vector.broadcast %97 : vector<1x128xf32> to vector<8x128xf32>
    %99 = arith.addf %96, %98 : vector<8x128xf32>
    %100 = arith.negf %99 : vector<8x128xf32>
    %101 = math.exp %100 : vector<8x128xf32>
    %cst_26 = arith.constant 1.000000e+00 : f32
    %102 = vector.broadcast %cst_26 : f32 to vector<8x128xf32>
    %103 = arith.addf %102, %101 : vector<8x128xf32>
    %104 = arith.divf %102, %103 : vector<8x128xf32>
    %105 = arith.truncf %104 : vector<8x128xf32> to vector<8x128xbf16>
    %c0_27 = arith.constant 0 : index
    %c0_28 = arith.constant 0 : index
    %106 = vector.load %arg7[%c0_27, %c0_28] : memref<8x128xbf16, #tpu.memory_space<vmem>>, vector<8x128xbf16>
    tpu.vector_store %arg7[%c0_27, %c0_28], %105 {strides = array<i32>} : memref<8x128xbf16, #tpu.memory_space<vmem>>, vector<8x128xbf16>,
    return
  }
  func.func @transform_0(%arg0: i32) -> (i32, i32) {
    %c0_i32 = arith.constant 0 : i32
    %c0_i32_0 = arith.constant 0 : i32
    return %arg0, %c0_i32 : i32, i32
  }
  func.func @transform_1(%arg0: i32) -> (i32, i32) {
    %c0_i32 = arith.constant 0 : i32
    %c0_i32_0 = arith.constant 0 : i32
    %c0_i32_1 = arith.constant 0 : i32
    return %c0_i32, %c0_i32_0 : i32, i32
  }
  func.func @transform_2(%arg0: i32) -> (i32, i32) {
    %c0_i32 = arith.constant 0 : i32
    %c0_i32_0 = arith.constant 0 : i32
    %c0_i32_1 = arith.constant 0 : i32
    return %c0_i32, %c0_i32_0 : i32, i32
  }
  func.func @transform_3(%arg0: i32) -> (i32, i32) {
    %c0_i32 = arith.constant 0 : i32
    %c0_i32_0 = arith.constant 0 : i32
    %c0_i32_1 = arith.constant 0 : i32
    return %c0_i32, %c0_i32_0 : i32, i32
  }
  func.func @transform_4(%arg0: i32) -> (i32, i32) {
    %c0_i32 = arith.constant 0 : i32
    %c0_i32_0 = arith.constant 0 : i32
    %c0_i32_1 = arith.constant 0 : i32
    return %c0_i32, %c0_i32_0 : i32, i32
  }
  func.func @transform_5(%arg0: i32) -> (i32, i32) {
    %c0_i32 = arith.constant 0 : i32
    %c0_i32_0 = arith.constant 0 : i32
    %c0_i32_1 = arith.constant 0 : i32
    return %c0_i32, %c0_i32_0 : i32, i32
  }
  func.func @transform_6(%arg0: i32) -> (i32, i32) {
    %c0_i32 = arith.constant 0 : i32
    %c0_i32_0 = arith.constant 0 : i32
    return %arg0, %c0_i32 : i32, i32
  }
}

</mosaic_0001>

<bundles_post_ra>
// kernel: one_short_understanding_forward.1
= control target key start
LH: loop header
LB: loop body
LE: loop exit
PB: predicated region body
PF: predicated region fallthrough
CT: control target
= control target key end

     0   :  { %vm638_vm0 = vcmask 130048   ;;  %s1978_s1 = inlined_call_operand.vmem [shape: bf16[784,256], index: 1, kind: input, shape index: {}]   ;;  %s1979_s0 = inlined_call_operand.vmem [shape: f32[8,784], index: 0, kind: input, shape index: {}]   ;;  %s1980_s4 = inlined_call_operand.vmem [shape: bf16[256,128], index: 4, kind: input, shape index: {}]   ;;  %s1981_s3 = inlined_call_operand.vmem [shape: f32[7,256], index: 3, kind: input, shape index: {}]   ;;  %s1982_s2 = inlined_call_operand.vmem [shape: f32[1,256], index: 2, kind: input, shape index: {}]   ;;  %s1983_s5 = inlined_call_operand.vmem [shape: f32[1,128], index: 5, kind: input, shape index: {}]   ;;  %s1984_s6 = inlined_call_operand.vmem [shape: bf16[8,128], index: 6, kind: output, shape index: {}]  }
   0x1   :  { %v1303_v0 = vld [vmem:[%s1978_s1 + $0x104] ss:$8 sps:$4 sm:$0xff]   ;;  %v1305_v1 = vld [vmem:[%s1978_s1 + $0x100] ss:$8 sps:$4 sm:$0xff]   ;;  %v1306_v2 = vld [vmem:[%s1978_s1 + $0x114] ss:$8 sps:$4 sm:$0xff]  }
   0x2   :  { %683 = vmatprep.subr.bf16.mxu0 %v1303_v0  ;;  %v1308_v3 = vld [vmem:[%s1978_s1 + $0x110] ss:$8 sps:$4 sm:$0xff]   ;;  %v1309_v4 = vld [vmem:[%s1978_s1 + $0x124] ss:$8 sps:$4 sm:$0xff]   ;;  %v1311_v5 = vld [vmem:[%s1978_s1 + $0x120] ss:$8 sps:$4 sm:$0xff]  }
   0x3   :  { %684 = vmatpush1.bf16.msra.mxu0 %v1305_v1  ;;  %v1312_v6 = vld [vmem:[%s1978_s1 + $0x134] ss:$8 sps:$4 sm:$0xff]   ;;  %v1314_v7 = vld [vmem:[%s1978_s1 + $0x130] ss:$8 sps:$4 sm:$0xff]   ;;  %v1315_v8 = vld [vmem:[%s1978_s1 + $0x144] ss:$8 sps:$4 sm:$0xff]  }
   0x4   :  { %685 = vmatprep.subr.bf16.mxu0 %v1306_v2  ;;  %v1317_v9 = vld [vmem:[%s1978_s1 + $0x140] ss:$8 sps:$4 sm:$0xff]   ;;  %v1318_v10 = vld [vmem:[%s1978_s1 + $0x154] ss:$8 sps:$4 sm:$0xff]   ;;  %v1320_v11 = vld [vmem:[%s1978_s1 + $0x150] ss:$8 sps:$4 sm:$0xff]  }
   0x5   :  { %v1345_v12 = vld [vmem:[%s1978_s1 + $0x4] ss:$8 sps:$4 sm:$0xff]   ;;  %v1347_v13 = vld [vmem:[%s1978_s1] ss:$8 sps:$4 sm:$0xff]   ;;  %v1351_v15 = vld [vmem:[%s1978_s1 + $0x14] ss:$8 sps:$4 sm:$0xff]  }
   0x6   :  { %v1321_v14 = vld [vmem:[%s1978_s1 + $0x164] ss:$8 sps:$4 sm:$0xff]   ;;  %642 = vmatprep.subr.bf16.mxu1 %v1345_v12  ;;  %v1353_v16 = vld [vmem:[%s1978_s1 + $0x10] ss:$8 sps:$4 sm:$0xff]   ;;  %v1323_v17 = vld [vmem:[%s1978_s1 + $0x160] ss:$8 sps:$4 sm:$0xff]  }
   0x7   :  { %686 = vmatpush1.bf16.msra.mxu0 %v1308_v3  ;;  %643 = vmatpush1.bf16.msra.mxu1 %v1347_v13  ;;  %v1324_v18 = vld [vmem:[%s1978_s1 + $0x174] ss:$8 sps:$4 sm:$0xff]   ;;  %v1357_v19 = vld [vmem:[%s1978_s1 + $0x24] ss:$8 sps:$4 sm:$0xff]   ;;  %v1359_v21 = vld [vmem:[%s1978_s1 + $0x20] ss:$8 sps:$4 sm:$0xff]  }
   0x8   :  { %687 = vmatprep.subr.bf16.mxu0 %v1309_v4  ;;  %644 = vmatprep.subr.bf16.mxu1 %v1351_v15  ;;  %v27_v20 = vld [vmem:[%s1979_s0 + $0x18] sm:$0xff]  ;;  %v1327_v24 = vld [vmem:[%s1978_s1 + $0x184] ss:$8 sps:$4 sm:$0xff]   ;;  %v1329_v26 = vld [vmem:[%s1978_s1 + $0x180] ss:$8 sps:$4 sm:$0xff]  }
   0x9   :  { %v34_v22 = vpack.c.bf16 %v27_v20, %v27_v20  ;;  %v1326_v23 = vld [vmem:[%s1978_s1 + $0x170] ss:$8 sps:$4 sm:$0xff]   ;;  %v1363_v25 = vld [vmem:[%s1978_s1 + $0x34] ss:$8 sps:$4 sm:$0xff]   ;;  %v1369_v28 = vld [vmem:[%s1978_s1 + $0x44] ss:$8 sps:$4 sm:$0xff]  }
   0xa   :  { %v1365_v27 = vld [vmem:[%s1978_s1 + $0x30] ss:$8 sps:$4 sm:$0xff]   ;;  %v1330_v29 = vld [vmem:[%s1978_s1 + $0x194] ss:$8 sps:$4 sm:$0xff]   ;;  %v1371_v31 = vld [vmem:[%s1978_s1 + $0x40] ss:$8 sps:$4 sm:$0xff]  }
   0xb   :  { %688 = vmatpush1.bf16.msra.mxu0 %v1311_v5  ;;  %645 = vmatpush1.bf16.msra.mxu1 %v1353_v16  ;;  %v1332_v30 = vld [vmem:[%s1978_s1 + $0x190] ss:$8 sps:$4 sm:$0xff]   ;;  %v1375_v32 = vld [vmem:[%s1978_s1 + $0x54] ss:$8 sps:$4 sm:$0xff]   ;;  %v1333_v33 = vld [vmem:[%s1978_s1 + $0x1a4] ss:$8 sps:$4 sm:$0xff]  }
   0xc   :  { %689 = vmatprep.subr.bf16.mxu0 %v1312_v6  ;;  %646 = vmatprep.subr.bf16.mxu1 %v1357_v19  ;;  %v1335_v34 = vld [vmem:[%s1978_s1 + $0x1a0] ss:$8 sps:$4 sm:$0xff]   ;;  %v1377_v35 = vld [vmem:[%s1978_s1 + $0x50] ss:$8 sps:$4 sm:$0xff]   ;;  %v1381_v36 = vld [vmem:[%s1978_s1 + $0x64] ss:$8 sps:$4 sm:$0xff]  }
   0xd   :  { %715 = vmatprep.mubr.bf16.mxu0 %v34_v22  ;;  %v1336_v37 = vld [vmem:[%s1978_s1 + $0x1b4] ss:$8 sps:$4 sm:$0xff]   ;;  %v1338_v38 = vld [vmem:[%s1978_s1 + $0x1b0] ss:$8 sps:$4 sm:$0xff]   ;;  %v1383_v39 = vld [vmem:[%s1978_s1 + $0x60] ss:$8 sps:$4 sm:$0xff]  }
   0xe   :  { %v1387_v40 = vld [vmem:[%s1978_s1 + $0x74] ss:$8 sps:$4 sm:$0xff]   ;;  %v1339_v41 = vld [vmem:[%s1978_s1 + $0x1c4] ss:$8 sps:$4 sm:$0xff]   ;;  %v1341_v42 = vld [vmem:[%s1978_s1 + $0x1c0] ss:$8 sps:$4 sm:$0xff]  }
   0xf   :  { %690 = vmatpush1.bf16.msra.mxu0 %v1314_v7  ;;  %647 = vmatpush1.bf16.msra.mxu1 %v1359_v21  ;;  %v1389_v43 = vld [vmem:[%s1978_s1 + $0x70] ss:$8 sps:$4 sm:$0xff]   ;;  %v1393_v44 = vld [vmem:[%s1978_s1 + $0x84] ss:$8 sps:$4 sm:$0xff]   ;;  %v1342_v45 = vld [vmem:[%s1978_s1 + $0x1d4] ss:$8 sps:$4 sm:$0xff]  }
  0x10   :  { %691 = vmatprep.subr.bf16.mxu0 %v1315_v8  ;;  %648 = vmatprep.subr.bf16.mxu1 %v1363_v25  ;;  %v1344_v46 = vld [vmem:[%s1978_s1 + $0x1d0] ss:$8 sps:$4 sm:$0xff]   ;;  %v1395_v47 = vld [vmem:[%s1978_s1 + $0x80] ss:$8 sps:$4 sm:$0xff]   ;;  %v1399_v48 = vld [vmem:[%s1978_s1 + $0x94] ss:$8 sps:$4 sm:$0xff]  }
  0x11   :  { %v1348_v49 = vld [vmem:[%s1978_s1 + $0x1e4] ss:$8 sps:$4 sm:$0xff]   ;;  %v1350_v50 = vld [vmem:[%s1978_s1 + $0x1e0] ss:$8 sps:$4 sm:$0xff]   ;;  %v1401_v51 = vld [vmem:[%s1978_s1 + $0x90] ss:$8 sps:$4 sm:$0xff]  }
  0x12   :  { %v1405_v52 = vld [vmem:[%s1978_s1 + $0xa4] ss:$8 sps:$4 sm:$0xff]   ;;  %v1354_v53 = vld [vmem:[%s1978_s1 + $0x1f4] ss:$8 sps:$4 sm:$0xff]   ;;  %v1356_v54 = vld [vmem:[%s1978_s1 + $0x1f0] ss:$8 sps:$4 sm:$0xff]  }
  0x13   :  { %692 = vmatpush1.bf16.msra.mxu0 %v1317_v9  ;;  %649 = vmatpush1.bf16.msra.mxu1 %v1365_v27  ;;  %v26_v55 = vld [vmem:[%s1979_s0 + $0x10] sm:$0xff]  ;;  %v1407_v56 = vld [vmem:[%s1978_s1 + $0xa0] ss:$8 sps:$4 sm:$0xff]   ;;  %v1362_v58 = vld [vmem:[%s1978_s1 + $0x204] ss:$8 sps:$4 sm:$0xff]  }
  0x14   :  { %693 = vmatprep.subr.bf16.mxu0 %v1318_v10  ;;  %650 = vmatprep.subr.bf16.mxu1 %v1369_v28  ;;  %v1411_v57 = vld [vmem:[%s1978_s1 + $0xb4] ss:$8 sps:$4 sm:$0xff]   ;;  %v33_v59 = vpack.c.bf16 %v26_v55, %v26_v55  ;;  %v1413_v60 = vld [vmem:[%s1978_s1 + $0xb0] ss:$8 sps:$4 sm:$0xff]   ;;  %v25_v61 = vld [vmem:[%s1979_s0 + $0x8] sm:$0xff] }
  0x15   :  { %v1360_v62 = vld [vmem:[%s1978_s1 + $0x200] ss:$8 sps:$4 sm:$0xff]   ;;  %v1417_v63 = vld [vmem:[%s1978_s1 + $0xc4] ss:$8 sps:$4 sm:$0xff]   ;;  %v32_v0 = vpack.c.bf16 %v25_v61, %v25_v61  ;;  %v1368_v1 = vld [vmem:[%s1978_s1 + $0x214] ss:$8 sps:$4 sm:$0xff]  }
  0x16   :  { %v1419_v2 = vld [vmem:[%s1978_s1 + $0xc0] ss:$8 sps:$4 sm:$0xff]   ;;  %v1366_v4 = vld [vmem:[%s1978_s1 + $0x210] ss:$8 sps:$4 sm:$0xff]   ;;  %v1423_v5 = vld [vmem:[%s1978_s1 + $0xd4] ss:$8 sps:$4 sm:$0xff]  }
  0x17   :  { %694 = vmatpush1.bf16.msra.mxu0 %v1320_v11  ;;  %651 = vmatpush1.bf16.msra.mxu1 %v1371_v31  ;;  %v29_v3 = vld [vmem:[%s1979_s0 + $0x28] sm:$0xff]  ;;  %v1425_v9 = vld [vmem:[%s1978_s1 + $0xd0] ss:$8 sps:$4 sm:$0xff]   ;;  %v1380_v11 = vld [vmem:[%s1978_s1 + $0x234] ss:$8 sps:$4 sm:$0xff]  }
  0x18   :  { %695 = vmatprep.subr.bf16.mxu0 %v1321_v14  ;;  %652 = vmatprep.subr.bf16.mxu1 %v1375_v32  ;;  %v36_v6 = vpack.c.bf16 %v29_v3, %v29_v3  ;;  %v1374_v7 = vld [vmem:[%s1978_s1 + $0x224] ss:$8 sps:$4 sm:$0xff]   ;;  %v1372_v8 = vld [vmem:[%s1978_s1 + $0x220] ss:$8 sps:$4 sm:$0xff]   ;;  %v1378_v12 = vld [vmem:[%s1978_s1 + $0x230] ss:$8 sps:$4 sm:$0xff]  }
  0x19   :  { %674 = vmatprep.mubr.bf16.mxu1 %v32_v0  ;;  %v1429_v10 = vld [vmem:[%s1978_s1 + $0xe4] ss:$8 sps:$4 sm:$0xff]   ;;  %v1431_v13 = vld [vmem:[%s1978_s1 + $0xe0] ss:$8 sps:$4 sm:$0xff]   ;;  %v1435_v14 = vld [vmem:[%s1978_s1 + $0xf4] ss:$8 sps:$4 sm:$0xff]  }
  0x1a   :  { %v1386_v15 = vld [vmem:[%s1978_s1 + $0x244] ss:$8 sps:$4 sm:$0xff]   ;;  %v1437_v16 = vld [vmem:[%s1978_s1 + $0xf0] ss:$8 sps:$4 sm:$0xff]   ;;  %v1392_v20 = vld [vmem:[%s1978_s1 + $0x254] ss:$8 sps:$4 sm:$0xff]  }
  0x1b   :  { %696 = vmatpush1.bf16.msra.mxu0 %v1323_v17  ;;  %653 = vmatpush1.bf16.msra.mxu1 %v1377_v35  ;;  %v24_v17 = vld [vmem:[%s1979_s0] sm:$0xff]  ;;  %v30_v27 = vld [vmem:[%s1979_s0 + $0x30] sm:$0xff]  ;;  %v1453_v35 = vld [vmem:[%s1980_s4 + $0x8] sm:$0xff]  }
  0x1c   :  { %697 = vmatprep.subr.bf16.mxu0 %v1324_v18  ;;  %654 = vmatprep.subr.bf16.mxu1 %v1381_v36  ;;  %v1384_v18 = vld [vmem:[%s1978_s1 + $0x240] ss:$8 sps:$4 sm:$0xff]   ;;  %v1446_v19 = vld [vmem:[%s1978_s1 + $0x304] ss:$8 sps:$4 sm:$0xff]   ;;  %v31_v21 = vpack.c.bf16 %v24_v17, %v24_v17  ;;  %v1402_v32 = vld [vmem:[%s1978_s1 + $0x270] ss:$8 sps:$4 sm:$0xff]  }
  0x1d   :  { %v1444_v22 = vld [vmem:[%s1978_s1 + $0x300] ss:$8 sps:$4 sm:$0xff]   ;;  %v1398_v25 = vld [vmem:[%s1978_s1 + $0x264] ss:$8 sps:$4 sm:$0xff]   ;;  %v1456_v55 = vld [vmem:[%s1980_s4 + $0x58] sm:$0xff]  }
  0x1e   :  { %v1396_v28 = vld [vmem:[%s1978_s1 + $0x260] ss:$8 sps:$4 sm:$0xff]   ;;  %v1462_v61 = vld [vmem:[%s1980_s4 + $0x70] sm:$0xff]   ;;  %v1465_v0 = vld [vmem:[%s1980_s4 + $0x38] sm:$0xff]  }
  0x1f   :  { %698 = vmatpush1.bf16.msra.mxu0 %v1326_v23  ;;  %655 = vmatpush1.bf16.msra.mxu1 %v1383_v39  ;;  %v1390_v23 = vld [vmem:[%s1978_s1 + $0x250] ss:$8 sps:$4 sm:$0xff]   ;;  %v1451_v31 = vld [vmem:[%s1980_s4] sm:$0xff]  }
  0x20   :  { %699 = vmatprep.subr.bf16.mxu0 %v1327_v24  ;;  %656 = vmatprep.subr.bf16.mxu1 %v1387_v40  ;;  %v1450_v24 = vld [vmem:[%s1980_s4 + $0x40] sm:$0xff]   ;;  %v1455_v39 = vld [vmem:[%s1980_s4 + $0x10] sm:$0xff]  }
  0x21   :  { %v1408_v36 = vld [vmem:[%s1978_s1 + $0x280] ss:$8 sps:$4 sm:$0xff]   ;;  %v1414_v40 = vld [vmem:[%s1978_s1 + $0x290] ss:$8 sps:$4 sm:$0xff]  }
  0x23   :  { %700 = vmatpush1.bf16.msra.mxu0 %v1329_v26  ;;  %657 = vmatpush1.bf16.msra.mxu1 %v1389_v43  ;;  %v1502_v26 = vmov 0   ;;  %v1428_v43 = vld [vmem:[%s1978_s1 + $0x2b4] ss:$8 sps:$4 sm:$0xff]  }
  0x24   :  { %701 = vmatprep.subr.bf16.mxu0 %v1330_v29  ;;  %658 = vmatprep.subr.bf16.mxu1 %v1393_v44  ;;  %v1404_v29 = vld [vmem:[%s1978_s1 + $0x274] ss:$8 sps:$4 sm:$0xff]   ;;  %v1426_v44 = vld [vmem:[%s1978_s1 + $0x2b0] ss:$8 sps:$4 sm:$0xff]  }
  0x27   :  { %702 = vmatpush1.bf16.msra.mxu0 %v1332_v30  ;;  %659 = vmatpush1.bf16.msra.mxu1 %v1395_v47  ;;  %v37_v30 = vpack.c.bf16 %v30_v27, %v30_v27  ;;  %v1440_v47 = vld [vmem:[%s1978_s1 + $0x2d4] ss:$8 sps:$4 sm:$0xff]  }
  0x28   :  { %703 = vmatprep.subr.bf16.mxu0 %v1333_v33  ;;  %660 = vmatprep.subr.bf16.mxu1 %v1399_v48  ;;  %v1452_v33 = vld [vmem:[%s1980_s4 + $0x48] sm:$0xff]   ;;  %v1438_v48 = vld [vmem:[%s1978_s1 + $0x2d0] ss:$8 sps:$4 sm:$0xff]  }
  0x2b   :  { %704 = vmatpush1.bf16.msra.mxu0 %v1335_v34  ;;  %661 = vmatpush1.bf16.msra.mxu1 %v1401_v51  ;;  %v1410_v34 = vld [vmem:[%s1978_s1 + $0x284] ss:$8 sps:$4 sm:$0xff]   ;;  %v1449_v51 = vld [vmem:[%s1978_s1 + $0x2f4] ss:$8 sps:$4 sm:$0xff]  }
  0x2c   :  { %705 = vmatprep.subr.bf16.mxu0 %v1336_v37  ;;  %662 = vmatprep.subr.bf16.mxu1 %v1405_v52  ;;  %v1454_v37 = vld [vmem:[%s1980_s4 + $0x50] sm:$0xff]  }
  0x2d   :  { %v1447_v52 = vld [vmem:[%s1978_s1 + $0x2f0] ss:$8 sps:$4 sm:$0xff]  }
  0x2f   :  { %706 = vmatpush1.bf16.msra.mxu0 %v1338_v38  ;;  %663 = vmatpush1.bf16.msra.mxu1 %v1407_v56  ;;  %v1416_v38 = vld [vmem:[%s1978_s1 + $0x294] ss:$8 sps:$4 sm:$0xff]  }
  0x30   :  { %707 = vmatprep.subr.bf16.mxu0 %v1339_v41  ;;  %664 = vmatprep.subr.bf16.mxu1 %v1411_v57  ;;  %v1422_v41 = vld [vmem:[%s1978_s1 + $0x2a4] ss:$8 sps:$4 sm:$0xff]   ;;  %v1457_v56 = vld [vmem:[%s1980_s4 + $0x18] sm:$0xff]  }
  0x31   :  { %v1458_v57 = vld [vmem:[%s1980_s4 + $0x60] sm:$0xff]  }
  0x33   :  { %708 = vmatpush1.bf16.msra.mxu0 %v1341_v42  ;;  %665 = vmatpush1.bf16.msra.mxu1 %v1413_v60  ;;  %v1420_v42 = vld [vmem:[%s1978_s1 + $0x2a0] ss:$8 sps:$4 sm:$0xff]  }
  0x34   :  { %709 = vmatprep.subr.bf16.mxu0 %v1342_v45  ;;  %666 = vmatprep.subr.bf16.mxu1 %v1417_v63  ;;  %v1434_v45 = vld [vmem:[%s1978_s1 + $0x2c4] ss:$8 sps:$4 sm:$0xff]   ;;  %v1464_v63 = vld [vmem:[%s1980_s4 + $0x78] sm:$0xff]  }
  0x35   :  { %v1461_v60 = vld [vmem:[%s1980_s4 + $0x28] sm:$0xff]  }
  0x37   :  { %710 = vmatpush1.bf16.msra.mxu0 %v1344_v46  ;;  %667 = vmatpush1.bf16.msra.mxu1 %v1419_v2  ;;  %v1432_v46 = vld [vmem:[%s1978_s1 + $0x2c0] ss:$8 sps:$4 sm:$0xff]  }
  0x38   :  { %711 = vmatprep.subr.bf16.mxu0 %v1348_v49  ;;  %668 = vmatprep.subr.bf16.mxu1 %v1423_v5  ;;  %v1443_v49 = vld [vmem:[%s1978_s1 + $0x2e4] ss:$8 sps:$4 sm:$0xff]  }
  0x39   :  { %v1909_v2 = vld [vmem:[%s1981_s3 + $0x8] sm:$0x7f] }
  0x3a   :  { %vm823_vm7 = vcmp.ne.f32.partialorder %v1909_v2, %v1909_v2 }
  0x3b   :  { %712 = vmatpush1.bf16.msra.mxu0 %v1350_v50  ;;  %669 = vmatpush1.bf16.msra.mxu1 %v1425_v9  ;;  %v1441_v50 = vld [vmem:[%s1978_s1 + $0x2e0] ss:$8 sps:$4 sm:$0xff]  }
  0x3c   :  { %713 = vmatprep.subr.bf16.mxu0 %v1354_v53  ;;  %670 = vmatprep.subr.bf16.mxu1 %v1429_v10  ;;  %v28_v53 = vld [vmem:[%s1979_s0 + $0x20] sm:$0xff] }
  0x3f   :  { %714 = vmatpush1.bf16.msra.mxu0 %v1356_v54  ;;  %671 = vmatpush1.bf16.msra.mxu1 %v1431_v13  ;;  %v35_v54 = vpack.c.bf16 %v28_v53, %v28_v53 }
  0x40   :  { %724 = vmatprep.subr.bf16.mxu0 %v1362_v58  ;;  %672 = vmatprep.subr.bf16.mxu1 %v1435_v14  ;;  %v1459_v58 = vld [vmem:[%s1980_s4 + $0x20] sm:$0xff]  }
  0x42   :  { %716 = vmatmul.mubr.bf16.vlgmr.msra.gmra.mrb[0].mxu0 %v33_v59  ;;  %v1460_v59 = vld [vmem:[%s1980_s4 + $0x68] sm:$0xff]  }
  0x43   :  { %725 = vmatpush1.bf16.msra.mxu0 %v1360_v62  ;;  %756 = vmatprep.mubr.bf16.mxu0 %v36_v6  ;;  %v1463_v62 = vld [vmem:[%s1980_s4 + $0x30] sm:$0xff]  }
  0x44   :  { %726 = vmatprep.subr.bf16.mxu0 %v1368_v1  ;;  %673 = vmatpush1.bf16.msra.mxu1 %v1437_v16  ;;  %v1904_v1 = vld [vmem:[%s1981_s3] sm:$0x7f] }
  0x45   :  { %765 = vmatprep.subr.bf16.mxu1 %v1446_v19  ;;  %v1912_v3 = vsub.f32 0.0, %v1904_v1  ;;  %v826_v5 = vand.u32 2147483647, %v1904_v1  ;;  %vm822_vm5 = vcmp.ne.f32.partialorder %v1904_v1, %v1904_v1 }
  0x47   :  { %727 = vmatpush1.bf16.msra.mxu0 %v1366_v4  ;;  %675 = vmatmul.mubr.bf16.vlgmr.msra.gmra.mrb[0].mxu1 %v31_v21  ;;  %v1915_v4 = vsub.f32 0.0, %v1909_v2  ;;  %v868_v6 = vand.u32 2147483647, %v1912_v3  ;;  %v828_v9 = vsub.f32 0.0, %v826_v5  ;;  %vm864_vm6 = vcmp.ne.f32.partialorder %v1912_v3, %v1912_v3 }
  0x48   :  { %728 = vmatprep.subr.bf16.mxu0 %v1374_v7  ;;  %766 = vmatpush1.bf16.msra.mxu1 %v1444_v22  ;;  %v827_v7 = vand.u32 2147483647, %v1909_v2 }
  0x49   :  { %797 = vmatprep.mubr.bf16.mxu1 %v1502_v26  ;;  %1270 = vmatprep.subr.bf16.mxu1 %v1450_v24  ;;  %v870_v10 = vsub.f32 0.0, %v868_v6  ;;  %v830_v13 = vmul.f32 1.442695, %v828_v9  ;;  %v1251_v26 = vmul.f32 -1.442695, %v1909_v2  ;;  %vm865_vm8 = vcmp.ne.f32.partialorder %v1915_v4, %v1915_v4 }
  0x4b   :  { %729 = vmatpush1.bf16.msra.mxu0 %v1372_v8  ;;  %v869_v8 = vand.u32 2147483647, %v1915_v4  ;;  %v872_v14 = vmul.f32 1.442695, %v870_v10  ;;  %1466 = vpow2.f32 %v830_v13 }
  0x4c   :  { %730 = vmatprep.subr.bf16.mxu0 %v1380_v11  ;;  %v829_v11 = vsub.f32 0.0, %v827_v7 }
  0x4d   :  { %1468 = vpow2.f32 %v872_v14 }
  0x4f   :  { %731 = vmatpush1.bf16.msra.mxu0 %v1378_v12  ;;  %1249 = vmatmul.mubr.msk.bf16.vlgmr.msra.gmra.mrb[4].mxu1 %vm638_vm0, %v37_v30  ;;  %v871_v12 = vsub.f32 0.0, %v869_v8 }
  0x50   :  { %732 = vmatprep.subr.bf16.mxu0 %v1386_v15  ;;  %1271 = vmatpush3.bf16.msra.mxu1 %v1451_v31  ;;  %v832_v15 = vmul.f32 1.442695, %v829_v11 }
  0x51   :  { %1272 = vmatprep.subr.bf16.mxu1 %v1452_v33  ;;  %v874_v16 = vmul.f32 1.442695, %v871_v12 }
  0x52   :  { %1470 = vpow2.f32 %v832_v15 }
  0x53   :  { %733 = vmatpush1.bf16.msra.mxu0 %v1384_v18  ;;  %1472 = vpow2.f32 %v874_v16 }
  0x54   :  { %734 = vmatprep.subr.bf16.mxu0 %v1392_v20  ;;  %1273 = vmatpush3.bf16.msra.mxu1 %v1453_v35 }
  0x55   :  { %1274 = vmatprep.subr.bf16.mxu1 %v1454_v37  ;;  %v1467_v17 = vpop.eup %1466 }
  0x56   :  { %v834_v21 = vadd.f32 1.0, %v1467_v17  ;;  %v837_v27 = vmul.f32 -0.5, %v1467_v17  ;;  %v840_v33 = vand.u32 2147483647, %v1467_v17 }
  0x57   :  { %735 = vmatpush1.bf16.msra.mxu0 %v1390_v23  ;;  %v1469_v18 = vpop.eup %1468 }
  0x58   :  { %736 = vmatprep.subr.bf16.mxu0 %v1398_v25  ;;  %1275 = vmatpush3.bf16.msra.mxu1 %v1455_v39  ;;  %v876_v22 = vadd.f32 1.0, %v1469_v18  ;;  %1474 = vlog2.f32 %v834_v21  ;;  %v1250_v25 = vmul.f32 -1.442695, %v1904_v1  ;;  %v838_v31 = vadd.f32 1.0, %v837_v27 }
  0x59   :  { %1276 = vmatprep.subr.bf16.mxu1 %v1456_v55  ;;  %vm1923_vm1 = vcmp.lt.f32.partialorder %v840_v33, 0.0004427343 }
  0x5a   :  { %1476 = vlog2.f32 %v876_v22 }
  0x5b   :  { %737 = vmatpush1.bf16.msra.mxu0 %v1396_v28  ;;  %v879_v28 = vmul.f32 -0.5, %v1469_v18 }
  0x5c   :  { %738 = vmatprep.subr.bf16.mxu0 %v1404_v29  ;;  %1277 = vmatpush3.bf16.msra.mxu1 %v1457_v56  ;;  %v1471_v19 = vpop.eup %1470 }
  0x5d   :  { %1278 = vmatprep.subr.bf16.mxu1 %v1458_v57  ;;  %v1473_v20 = vpop.eup %1472  ;;  %v843_v23 = vadd.f32 1.0, %v1471_v19  ;;  %v846_v29 = vmul.f32 -0.5, %v1471_v19  ;;  %v849_v39 = vand.u32 2147483647, %v1471_v19  ;;  %v862_v57 = vmax.f32 %v1912_v3, 0.0 }
  0x5e   :  { %v885_v24 = vadd.f32 1.0, %v1473_v20  ;;  %v888_v30 = vmul.f32 -0.5, %v1473_v20 }
  0x5f   :  { %739 = vmatpush1.bf16.msra.mxu0 %v1402_v32  ;;  %1478 = vlog2.f32 %v843_v23  ;;  %v847_v37 = vadd.f32 1.0, %v846_v29  ;;  %vm1932_vm3 = vcmp.lt.f32.partialorder %v849_v39, 0.0004427343 }
  0x60   :  { %740 = vmatprep.subr.bf16.mxu0 %v1410_v34  ;;  %1279 = vmatpush3.bf16.msra.mxu1 %v1459_v58  ;;  %1480 = vlog2.f32 %v885_v24  ;;  %v880_v34 = vadd.f32 1.0, %v879_v28 }
  0x61   :  { %1280 = vmatprep.subr.bf16.mxu1 %v1460_v59  ;;  %1482 = vpow2.f32 %v1250_v25 }
  0x62   :  { %1484 = vpow2.f32 %v1251_v26  ;;  %v1475_v32 = vpop.eup %1474 }
  0x63   :  { %741 = vmatpush1.bf16.msra.mxu0 %v1408_v36  ;;  %v882_v36 = vand.u32 2147483647, %v1469_v18 }
  0x64   :  { %742 = vmatprep.subr.bf16.mxu0 %v1416_v38  ;;  %1281 = vmatpush3.bf16.msra.mxu1 %v1461_v60  ;;  %v1477_v35 = vpop.eup %1476 }
  0x65   :  { %1282 = vmatprep.subr.bf16.mxu1 %v1462_v61  ;;  %vm1927_vm2 = vcmp.lt.f32.partialorder %v882_v36, 0.0004427343  ;;  %v821_v61 = vmax.f32 %v1909_v2, 0.0 }
  0x67   :  { %743 = vmatpush1.bf16.msra.mxu0 %v1414_v40  ;;  %v889_v40 = vadd.f32 1.0, %v888_v30 }
  0x68   :  { %744 = vmatprep.subr.bf16.mxu0 %v1422_v41  ;;  %1283 = vmatpush3.bf16.msra.mxu1 %v1463_v62 }
  0x69   :  { %1284 = vmatprep.subr.bf16.mxu1 %v1464_v63  ;;  %v1479_v38 = vpop.eup %1478  ;;  %v890_v55 = vmul.f32 %v1473_v20, %v889_v40 }
  0x6a   :  { %v1481_v41 = vpop.eup %1480 }
  0x6b   :  { %745 = vmatpush1.bf16.msra.mxu0 %v1420_v42  ;;  %v836_v42 = vmul.f32 0.6931472, %v1475_v32 }
  0x6c   :  { %746 = vmatprep.subr.bf16.mxu0 %v1428_v43  ;;  %1285 = vmatpush3.bf16.msra.mxu1 %v1465_v0  ;;  %v839_v43 = vmul.f32 %v1467_v17, %v838_v31  ;;  %v863_v0 = vmax.f32 %v1915_v4, 0.0 }
  0x6e   :  { %v842_v56 = vsel %vm1923_vm1, %v839_v43, %v836_v42 }
  0x6f   :  { %747 = vmatpush1.bf16.msra.mxu0 %v1426_v44  ;;  %v891_v44 = vand.u32 2147483647, %v1473_v20 }
  0x70   :  { %748 = vmatprep.subr.bf16.mxu0 %v1434_v45 }
  0x71   :  { %vm1939_vm4 = vcmp.lt.f32.partialorder %v891_v44, 0.0004427343 }
  0x73   :  { %749 = vmatpush1.bf16.msra.mxu0 %v1432_v46  ;;  %v878_v46 = vmul.f32 0.6931472, %v1477_v35 }
  0x74   :  { %750 = vmatprep.subr.bf16.mxu0 %v1440_v47  ;;  %v881_v47 = vmul.f32 %v1469_v18, %v880_v34 }
  0x76   :  { %v884_v60 = vsel %vm1927_vm2, %v881_v47, %v878_v46 }
  0x77   :  { %751 = vmatpush1.bf16.msra.mxu0 %v1438_v48  ;;  %v894_v9 = vadd.f32 %v884_v60, %v862_v57 }
  0x78   :  { %752 = vmatprep.subr.bf16.mxu0 %v1443_v49  ;;  %v845_v49 = vmul.f32 0.6931472, %v1479_v38 }
  0x79   :  { %v896_v16 = vsel %vm864_vm6, %v1912_v3, %v894_v9 }
  0x7a   :  { %v898_v21 = vsub.f32 0.0, %v896_v16 }
  0x7b   :  { %753 = vmatpush1.bf16.msra.mxu0 %v1441_v50  ;;  %v848_v50 = vmul.f32 %v1471_v19, %v847_v37 }
  0x7c   :  { %754 = vmatprep.subr.bf16.mxu0 %v1449_v51  ;;  %v1483_v51 = vpop.eup %1482  ;;  %v902_v28 = vrot.slane %v898_v21, 7 }
  0x7d   :  { %v1485_v59 = vpop.eup %1484  ;;  %v814_v62 = vadd.f32 1.0, %v1483_v51  ;;  %v851_v63 = vsel %vm1932_vm3, %v848_v50, %v845_v49 }
  0x7e   :  { %v815_v10 = vadd.f32 1.0, %v1485_v59  ;;  %v853_v12 = vadd.f32 %v851_v63, %v821_v61 }
  0x7f   :  { %755 = vmatpush1.bf16.msra.mxu0 %v1447_v52  ;;  %v820_v52 = vmax.f32 %v1904_v1, 0.0  ;;  %1486 = vrcp.f32 %v814_v62 }
  0x80   :  { %1488 = vrcp.f32 %v815_v10  ;;  %v855_v17 = vsel %vm823_vm7, %v1909_v2, %v853_v12 }
  0x81   :  { %v852_v6 = vadd.f32 %v842_v56, %v820_v52  ;;  %v859_v23 = vadd.f32 1.0, %v855_v17  ;;  %v857_v30 = vadd.f32 0.1, %v855_v17 }
  0x82   :  { %757 = vmatmul.mubr.bf16.vlgmr.msra.gmra.mrb[0].mxu0 %v35_v54  ;;  %v887_v54 = vmul.f32 0.6931472, %v1481_v41  ;;  %v138_v41 = vlaneseq }
  0x83   :  { %v854_v15 = vsel %vm822_vm5, %v1904_v1, %v852_v6  ;;  %v929_v31 = vrot.slane %v859_v23, 1 }
  0x84   :  { %v893_v7 = vsel %vm1939_vm4, %v890_v55, %v887_v54  ;;  %v858_v18 = vadd.f32 1.0, %v854_v15  ;;  %v856_v26 = vadd.f32 0.1, %v854_v15  ;;  %v139_v46 = vshrl.u32 %v138_v41, 7  ;;  %v136_v54 = vld [vmem:[%s1982_s2] sm:$0x3] }
  0x85   :  { %v895_v14 = vadd.f32 %v893_v7, %v863_v0  ;;  %v933_v34 = vmul.f32 %v929_v31, %v857_v30 }
  0x86   :  { %v928_v27 = vrot.slane %v858_v18, 1  ;;  %v140_v53 = vsub.s32 0, %v139_v46  ;;  %v144_v55 = vsub.s32 1, %v139_v46 }
  0x87   :  { %v897_v19 = vsel %vm865_vm8, %v1915_v4, %v895_v14  ;;  %v937_v37 = vrot.slane %v933_v34, 3 }
  0x88   :  { %v899_v25 = vsub.f32 0.0, %v897_v19  ;;  %v932_v33 = vmul.f32 %v928_v27, %v856_v26  ;;  %v141_v60 = vrot.slane %v136_v54, %v140_v53  ;;  %v145_v61 = vrot.slane %v136_v54, %v144_v55 }
  0x89   :  { %v1487_v29 = vpop.eup %1486 }
  0x8a   :  { %v903_v3 = vrot.slane %v899_v25, 7  ;;  %v1489_v32 = vpop.eup %1488  ;;  %v906_v2 = vmul.f32 %v1487_v29, %v902_v28  ;;  %v936_v4 = vrot.slane %v932_v33, 3  ;;  %v914_v39 = vrot.slane %v1487_v29, 1 }
  0x8b   :  { %v915_v40 = vrot.slane %v1489_v32, 1  ;;  %v920_v43 = vrot.slane %v1487_v29, 2  ;;  %v921_v45 = vrot.slane %v1489_v32, 2 }
  0x8c   :  { %v907_v35 = vmul.f32 %v1489_v32, %v903_v3  ;;  %v908_v36 = vmul.f32 1.442695, %v906_v2  ;;  %1490 = vrcp.f32 %v936_v4  ;;  %v918_v42 = vmul.f32 %v1487_v29, %v914_v39 }
  0x8d   :  { %v919_v44 = vmul.f32 %v1489_v32, %v915_v40 }
  0x8e   :  { %v910_v38 = vmul.f32 1.442695, %v907_v35  ;;  %1492 = vpow2.f32 %v908_v36  ;;  %v924_v49 = vmul.f32 %v920_v43, %v918_v42 }
  0x8f   :  { %1494 = vrcp.f32 %v937_v37  ;;  %v925_v51 = vmul.f32 %v921_v45, %v919_v44 }
  0x90   :  { %1496 = vpow2.f32 %v910_v38 }
  0x96   :  { %v1491_v47 = vpop.eup %1490 }
  0x97   :  { %v941_v56 = vmul.f32 %v1491_v47, %v924_v49 }
  0x98   :  { %v1493_v48 = vpop.eup %1492 }
  0x99   :  { %v1495_v50 = vpop.eup %1494  ;;  %v946_v57 = vrot.slane %v1493_v48, 6 }
  0x9a   :  { %v1497_v52 = vpop.eup %1496  ;;  %v943_v58 = vmul.f32 %v1495_v50, %v925_v51 }
  0x9b   :  { %v947_v59 = vrot.slane %v1497_v52, 6  ;;  %v950_v62 = vmul.f32 %v946_v57, %v941_v56 }
  0x9d   :  { %v951_v63 = vmul.f32 %v947_v59, %v943_v58  ;;  %v955_v10 = vrot.slane %v950_v62, %v140_v53 }
  0x9f   :  { %v959_v14 = vrot.slane %v951_v63, %v140_v53 }
 0x11a   :  { %v1949_v5 = vpop.f32.mrb[0].mxu1 }
 0x11b   :  { %v1953_v8 = vpop.f32.mrb[1].mxu1  ;;  %v677_v0 = vadd.f32 %v1949_v5, %v141_v60  ;;  %v1252_v5 = vld [vmem:[%s1983_s5] ss:$0 sm:$0xff] }
 0x11c   :  { %v680_v11 = vpop.f32.mrb[2].mxu1  ;;  %v679_v6 = vadd.f32 %v1953_v8, %v145_v61 }
 0x11d   :  { %v681_v13 = vpop.f32.mrb[3].mxu1 }
 0x122   :  { %v799_v20 = vpop.f32.mrb[4].mxu1 }
 0x123   :  { %v801_v22 = vpop.f32.mrb[5].mxu1 }
 0x124   :  { %v803_v24 = vpop.f32.mrb[6].mxu1 }
 0x125   :  { %v804_v1 = vpop.f32.mrb[7].mxu1 }
 0x155   :  { %v758_v7 = vpop.f32.mrb[0].mxu0 }
 0x156   :  { %v1293_v9 = vadd.f32 %v758_v7, %v677_v0  ;;  %v760_v11 = vpop.f32.mrb[1].mxu0 }
 0x157   :  { %v1296_v12 = vadd.f32 %v760_v11, %v679_v6  ;;  %v762_v13 = vpop.f32.mrb[2].mxu0 }
 0x158   :  { %v1294_v15 = vadd.f32 %v1293_v9, %v799_v20  ;;  %v763_v16 = vpop.f32.mrb[3].mxu0 }
 0x159   :  { %v1297_v17 = vadd.f32 %v1296_v12, %v801_v22 }
 0x15a   :  { %v960_v18 = vmul.f32 %v1294_v15, %v955_v10 }
 0x15b   :  { %v961_v19 = vmul.f32 %v1297_v17, %v959_v14 }
 0x15c   :  { %v962_v23 = vpack.c.bf16 %v960_v18, %v960_v18 }
 0x15d   :  { %v963_v21 = vpack.c.bf16 %v961_v19, %v961_v19 }
 0x15f   :  { %1131 = vmatprep.mubr.bf16.mxu1 %v963_v21 }
 0x160   :  { %1132 = vmatmul.mubr.bf16.vlgmr.msra.gmra.mrb[8].mxu1 %v962_v23 }
 0x233   :  { %v1286_v24 = vpop.f32.mrb[8].mxu1 }
 0x234   :  { %v1287_v8 = vpop.f32.mrb[9].mxu1 }
 0x235   :  { %v1288_v25 = vadd.f32 %v1287_v8, %v1286_v24  ;;  %v1289_v26 = vpop.f32.mrb[10].mxu1 }
 0x236   :  { %v1290_v27 = vpop.f32.mrb[11].mxu1 }
 0x237   :  { %v1134_v1 = vadd.f32 %v1288_v25, %v1252_v5 }
 0x239   :  { %v1269_v28 = vmul.f32 -1.442695, %v1134_v1 }
 0x23b   :  { %1498 = vpow2.f32 %v1269_v28 }
 0x245   :  { %v1499_v20 = vpop.eup %1498 }
 0x246   :  { %v1142_v22 = vadd.f32 1.0, %v1499_v20 }
 0x248   :  { %1500 = vrcp.f32 %v1142_v22 }
 0x252   :  { %v1501_v29 = vpop.eup %1500 }
 0x253   :  { %v1145_v30 = vpack.c.bf16 %v1501_v29, %v1501_v29 }
 0x255   :  { %1146 = vst [vmem:[%s1984_s6] sm:$0xf] %v1145_v30 }

</bundles_post_ra>
